<compile_context>
chip_gen: v5e
topology: v5e:2x2
jax: 0.10.0
libtpu: 0.0.40
codegen_flags: <defaults>
</compile_context>

<pallas_src>
import jax
import jax.numpy as jnp
from jax.experimental import pallas as pl
from jax.experimental.pallas import tpu as pltpu

NEG_SLOPE = 0.01  # F.leaky_relu default (used only by the pure-JAX reference)


def attention_predictor_kernel(onehot_ref, g_ref, o_ref):
    # onehot_ref: (N, TE) bf16 src one-hot gather tile (edges on the lane axis)
    # g_ref:      (8, N)  f32  node slab, row 0 = bf16-exact hi(sum_f h), row 1 = lo residual
    # o_ref:      (1, TE) f32  per-edge scores (lane-dense store)
    onehot = onehot_ref[...].astype(jnp.float32)  # 0/1 values are exact in bf16
    # Per-edge gather of the node feature sums on the MXU: (8, N) @ (N, TE) -> (8, TE).
    scores = jnp.dot(g_ref[...], onehot, preferred_element_type=jnp.float32)
    o_ref[...] = scores[0:1, :] + scores[1:2, :]  # hi + lo recombine, (1, TE)


def attention_predictor(h, src, dst, gate_w, gate_b, *, edge_tile=None):
    """Mirrors AttentionPredictor.forward(g, h) -> per-edge score, shape (E,).

    gate_w / gate_b / dst are accepted for interface parity but are mathematically
    dead: softmax over the width-1 gate axis is identically 1 for finite logits.
    """
    del dst, gate_w, gate_b  # dead path (see header comment / TODO)
    n, f = h.shape
    e = src.shape[0]

    # Lane-dense edge tile.  Default 512 amortizes the ~0.35 us per-grid-step overhead;
    # shrink for tiny graphs so there are still >= 2 grid steps (v7x has 2 TensorCores).
    if edge_tile is None:
        edge_tile = 512
        while edge_tile > 128 and e <= edge_tile:
            edge_tile //= 2

    e_pad = ((e + edge_tile - 1) // edge_tile) * edge_tile
    pad = e_pad - e
    if pad:
        # Dummy edges src=0; their scores are computed and sliced off below.
        src = jnp.concatenate([src, jnp.zeros((pad,), src.dtype)])

    # Dense one-hot gather matrix, edges on the lane axis: (N, E_pad) in bf16 (exact).
    onehot_src = jax.nn.one_hot(src, n, dtype=jnp.bfloat16).T

    # Grid-invariant node projection hoisted out of the kernel.  Only the "ones row"
    # (per-node feature sum) survives the identically-1 gate.  Split into a bf16-exact
    # hi part plus f32 residual so the MXU gather is exact at default precision.
    node_sum = jnp.sum(h.astype(jnp.float32), axis=1)               # (N,)
    hi = node_sum.astype(jnp.bfloat16).astype(jnp.float32)          # exactly bf16-representable
    lo = node_sum - hi                                              # |lo| <= 2^-9 |node_sum|
    g_slab = jnp.zeros((8, n), jnp.float32).at[0].set(hi).at[1].set(lo)

    n_tiles = e_pad // edge_tile
    out = pl.pallas_call(
        attention_predictor_kernel,
        out_shape=jax.ShapeDtypeStruct((1, e_pad), jnp.float32),
        grid=(n_tiles,),
        in_specs=[
            pl.BlockSpec((n, edge_tile), lambda i: (0, i)),  # bf16 one-hot gather tile
            pl.BlockSpec((8, n), lambda i: (0, 0)),          # resident node slab
        ],
        out_specs=pl.BlockSpec((1, edge_tile), lambda i: (0, i)),
        compiler_params=pltpu.CompilerParams(
            dimension_semantics=("parallel",),  # edge tiles are independent -> split over 2 TCs on v7x
            vmem_limit_bytes=32 << 20,          # explicit budget: fits v7x's 64 MiB, raises v5e's 16 MiB default
        ),
    )(onehot_src, g_slab)
    return out[0, :e]


def attention_predictor_ref(h, src, dst, gate_w, gate_b):
    """Pure-JAX reference following the torch code line by line."""
    h_src = h[src]
    h_dst = h[dst]
    cat = jnp.concatenate([h_src, h_dst], axis=1)            # (E, 2F)
    gate = cat @ gate_w.T + gate_b                           # (E, 1)
    gate = jnp.where(gate >= 0.0, gate, NEG_SLOPE * gate)    # leaky_relu
    gate = jax.nn.softmax(gate, axis=1)                      # width-1 axis -> 1
    return jnp.sum(gate * h_src, axis=1)                     # (E,)


if __name__ == "__main__":
    key = jax.random.PRNGKey(0)
    k_feat, k_src, k_dst, k_w, k_b = jax.random.split(key, 5)

    # Small shapes: in_feats = 128, 128 nodes, 200 edges (padded to 2 x 128-edge tiles).
    N, F, E = 128, 128, 200
    h = jax.random.normal(k_feat, (N, F), jnp.float32)
    src = jax.random.randint(k_src, (E,), 0, N, jnp.int32)
    dst = jax.random.randint(k_dst, (E,), 0, N, jnp.int32)
    # gate_nn = nn.Linear(2 * in_feats, 1)
    gate_w = jax.random.normal(k_w, (1, 2 * F), jnp.float32) * (1.0 / (2 * F) ** 0.5)
    gate_b = jax.random.normal(k_b, (1,), jnp.float32) * 0.1

    score = attention_predictor(h, src, dst, gate_w, gate_b)
    score = jax.block_until_ready(score)

    ref = attention_predictor_ref(h, src, dst, gate_w, gate_b)
    assert score.shape == (E,)
    assert bool(jnp.all(jnp.isfinite(score)))
    # One-hot gather is exact and node sums travel as hi/lo bf16-exact pairs, so only
    # f32 summation-order differences remain.
    max_err = float(jnp.max(jnp.abs(score - ref)))
    assert max_err < 5e-3, f"max abs err vs reference: {max_err}"
    print("KERNEL_OK")
</pallas_src>

<mosaic_0001>
module attributes {stable_mosaic.version = 11 : i64} {
  func.func @attention_predictor_kernel(%arg0: i32, %arg1: memref<128x128xbf16, #tpu.memory_space<vmem>>, %arg2: memref<8x128xf32, #tpu.memory_space<vmem>>, %arg3: memref<1x128xf32, #tpu.memory_space<vmem>>) attributes {dimension_semantics = [#tpu.dimension_semantics<parallel>], iteration_bounds = array<i64: 2>, scalar_prefetch = 0 : i64, scratch_operands = 0 : i64, tpu.core_type = #tpu.core_type<tc>, window_params = [{transform_indices = @transform_0, window_bounds = array<i64: 128, 128>}, {pipeline_mode = #tpu.pipeline_mode<synchronous>, transform_indices = @transform_1, window_bounds = array<i64: 8, 128>}, {transform_indices = @transform_2, window_bounds = array<i64: 1, 128>}]} {
    %c0 = arith.constant 0 : index
    %c0_0 = arith.constant 0 : index
    %0 = vector.load %arg1[%c0, %c0_0] : memref<128x128xbf16, #tpu.memory_space<vmem>>, vector<128x128xbf16>
    %1 = arith.extf %0 : vector<128x128xbf16> to vector<128x128xf32>
    %c0_1 = arith.constant 0 : index
    %c0_2 = arith.constant 0 : index
    %2 = vector.load %arg2[%c0_1, %c0_2] : memref<8x128xf32, #tpu.memory_space<vmem>>, vector<8x128xf32>
    %cst = arith.constant dense<0.000000e+00> : vector<8x128xf32>
    %3 = tpu.matmul %2, %1, %cst {dimension_numbers = #tpu.dot_dimension_numbers<[1], [0], [0], [1], [0, 0, 1, 1], [], []>} : vector<8x128xf32>, vector<128x128xf32>, vector<8x128xf32> -> vector<8x128xf32>
    %4 = vector.extract_strided_slice %3 {offsets = [0, 0], sizes = [1, 128], strides = [1, 1]} : vector<8x128xf32> to vector<1x128xf32>
    %5 = vector.extract_strided_slice %3 {offsets = [1, 0], sizes = [1, 128], strides = [1, 1]} : vector<8x128xf32> to vector<1x128xf32>
    %6 = arith.addf %4, %5 : vector<1x128xf32>
    %c0_3 = arith.constant 0 : index
    %c0_4 = arith.constant 0 : index
    %7 = vector.load %arg3[%c0_3, %c0_4] : memref<1x128xf32, #tpu.memory_space<vmem>>, vector<1x128xf32>
    tpu.vector_store %arg3[%c0_3, %c0_4], %6 {strides = array<i32>} : memref<1x128xf32, #tpu.memory_space<vmem>>, vector<1x128xf32>,
    return
  }
  func.func @transform_0(%arg0: i32) -> (i32, i32) {
    %c0_i32 = arith.constant 0 : i32
    %c0_i32_0 = arith.constant 0 : i32
    return %c0_i32, %arg0 : i32, i32
  }
  func.func @transform_1(%arg0: i32) -> (i32, i32) {
    %c0_i32 = arith.constant 0 : i32
    %c0_i32_0 = arith.constant 0 : i32
    %c0_i32_1 = arith.constant 0 : i32
    return %c0_i32, %c0_i32_0 : i32, i32
  }
  func.func @transform_2(%arg0: i32) -> (i32, i32) {
    %c0_i32 = arith.constant 0 : i32
    %c0_i32_0 = arith.constant 0 : i32
    return %c0_i32, %arg0 : i32, i32
  }
}

</mosaic_0001>

<bundles_post_ra>
// kernel: tpu_custom_call.1
= control target key start
LH: loop header
LB: loop body
LE: loop exit
PB: predicated region body
PF: predicated region fallthrough
CT: control target
= control target key end

     0   :  { %7 = vsyncpa [#allocation3], 0  ;;  %s738_s0 = inlined_call_operand.hbm [shape: bf16[128,256], index: 0, kind: input, shape index: {}]   ;;  %s739_s1 = inlined_call_operand.hbm [shape: f32[8,128], index: 1, kind: input, shape index: {}]   ;;  %s740_s2 = inlined_call_operand.hbm [shape: f32[1,256], index: 2, kind: output, shape index: {}]  }
   0x1   :  { %9 = vsyncpa [#allocation3 + $0x1], 0 }
   0x2   :  { %10 = vsyncpa [#allocation6], 0 }
   0x3   :  { %11 = vsyncpa [#allocation4], 0 }
   0x4   :  { %13 = vsyncpa [#allocation4 + $0x1], 0  ;;  %s585_s9 = smov 0   ;;  %s587_s10 = smov 0  }
   0x5   :  { %s589_s11 = smov 0   ;;  %s591_s12 = smov 0  }
   0x6 LB: > { %s606_s13 = sadd.s32 4294967295, %s564_s12   ;;  %s324_s14 = sadd.s32 4294967294, %s564_s12   ;;  %s564_s12 = sphi %s591_s12, %s751_s12   ;;  %s560_s11 = sphi %s589_s11, %s750_s11   ;;  %s556_s10 = sphi %s587_s10, %s749_s10   ;;  %s552_s9 = sphi %s585_s9, %s748_s9  }
   0x7   : > { %s610_s15 = sadd.s32 1, %s564_s12   ;;  %s26_s16 = sadd.s32 1, %s560_s11 }
   0x8   : > { %s23_s17 = ssub.s32 %s564_s12, %s610_s15  ;;  %p33_p0 = scmp.ne.s32.totalorder %s560_s11, %s556_s10 }
   0x9   : > { %p24_p1 = scmp.eq.s32.totalorder %s23_s17, 0  ;;  %p34_p2 = scmp.eq.s32.totalorder %s564_s12, 0 }
   0xa   : > { %p39_p3 = scmp.ne.s32.totalorder %s556_s10, %s552_s9  ;;  %p40_p4 = scmp.eq.s32.totalorder %s606_s13, 0 }
   0xb   : > { %s622_s18 = scalar_select %p24_p1, %s560_s11, %s26_s16  }
   0xc   : > { %p624_p5 = por %p34_p2, %p33_p0  ;;  %p630_p6 = por %p40_p4, %p39_p3 }
   0xd   : > { %p84_p7 = scmp.eq.s32.totalorder %s606_s13, 1  ;;  %p90_p8 = scmp.eq.s32.totalorder %s324_s14, 1 }
   0xe   : > { %p325_p9 = scmp.ge.s32.totalorder %s564_s12, 1  ;;  %p97_p10 = scmp.lt.s32.totalorder %s564_s12, 3 }
   0xf   : > { %p637_p11 = por %p84_p7, %p33_p0  ;;  %p641_p12 = por %p90_p8, %p39_p3 }
  0x10   : > { %p645_p13 = pnand %p325_p9, %p97_p10  ;;  %s109_s26 = sshll.u32 %s739_s1, 4  ;;  %s110_s26 = int_to_ptr.hbm [resolvable:$true] %s109_s26 }
  0x11   : > { %s566_s27 = smov [#allocation5]   ;;  %p395_p3 = scmp.lt.s32.totalorder %s564_s12, 2 }
  0x12   : > { %p382_p1 = pneg %p645_p13  ;;  %s111_s28 = sshll.u32 %s566_s27, 4  ;;  %s112_s28 = int_to_ptr.vmem [resolvable:$true] %s111_s28 }
  0x13   : > { %s122_s29 = sand.u32 1, %s560_s11   ;;  %p661_p7 = pnand %p395_p3, %p624_p5 }
  0x14   : > { %p383_p2 = pnand %p382_p1, %p40_p4  ;;  %s328_s3 = sshll.u32 %s122_s29, 6 }
  0x15   : > { %s329_s4 = sshll.u32 %s564_s12, 2  ;;  %s126_s14 = scalar_lea.vmem [#allocation2], %s328_s3 }
  0x16   : > { %385 = dma.hbm_to_vmem [thread:$0]  (!%p383_p2), %s110_s26, 128, %s112_s28, [#allocation6]  }
  0x17   : > { %s130_s7 = scalar_lea.hbm %s738_s0, %s329_s4  ;;  %s133_s16 = sshll.u32 %s126_s14, 4  ;;  %s134_s16 = int_to_ptr.vmem [resolvable:$true] %s133_s16 }
  0x18   : > { %s131_s8 = sshll.u32 %s130_s7, 4  ;;  %s123_s17 = scalar_lea.sflag [#allocation3], %s122_s29  ;;  %s132_s8 = int_to_ptr.hbm [resolvable:$true] %s131_s8 }
  0x19   : > { %s464_s24 = sshra.s32 %s132_s8, 4  ;;  %p468_p8 = pneg %p661_p7  ;;  %s465_s24 = int_to_ptr.hbm [resolvable:$true] %s464_s24 }
  0x1a   : > { %s466_s19 = scalar_lea.hbm %s465_s24, 64  ;;  %s471_s27 = scalar_lea.hbm %s738_s0, 128 }
  0x1b   : > { %p467_p5 = scmp.ne.s32.totalorder %s465_s24, %s466_s19  ;;  %p472_p1 = scmp.lt.s32.totalorder %s465_s24, %s738_s0 }
  0x1c   : > { %p473_p2 = scmp.lt.s32.totalorder %s471_s27, %s466_s19 }
  0x1d   : > { %p469_p9 = pnand %p468_p8, %p467_p5 }
  0x1e   : > { %p474_p3 = por %p473_p2, %p472_p1 }
  0x1f   : > { %p470_p10 = pneg %p469_p9 }
  0x21   : > { %p475_p0 = pnand %p474_p3, %p470_p10 }
  0x23   : > { %478 = shalt.err (!%p475_p0)
}
  0x24   : > { %s567_s29 = smov 128   ;;  %s568_s3 = smov 64  }
  0x25   : > { %s569_s5 = smov 4   ;;  %145 = sbr.rel (%p645_p13) target bundleno = 212 (0xd4), region = 28 }
  0x26   : > { %389 = dma.hbm_to_vmem [thread:$0]  (!%p661_p7), %s132_s8, 1024, %s134_s16, %s123_s17, %s567_s29, %s568_s3, %s569_s5  }
  0x27   : > { %s682_s6 = sand.u32 (!%p645_p13), 1, %s556_s10  }
  0x28   : > { %s331_s7 = sshll.u32 (!%p645_p13), %s682_s6, 6  ;;  %s148_s14 = scalar_lea.sflag (!%p645_p13), [#allocation3], %s682_s6 }
  0x29   : > { %s686_s24 = scalar_lea.vmem (!%p645_p13), [#allocation2], %s331_s7 }
  0x2a   : > { %539 = dma.done.wait (%p630_p6), %s148_s14, 1024  }
  0x2b   : > { %541 = vsyncadd (%p630_p6), %s148_s14, 4294966272 }
  0x2c   : > { %543 = dma.done.wait (%p40_p4), [#allocation6], 128  }
  0x2d   : > { %545 = vsyncadd (%p40_p4), [#allocation6], 4294967168  ;;  %v373_v0 = vld [vmem:[%s686_s24 + $0x38] sm:$0xff]   ;;  %v372_v1 = vld [vmem:[%s686_s24 + $0x30] sm:$0xff]   ;;  %s244_s30 = scalar_lea.hbm %s740_s2, %s606_s13  ;;  %s176_s8 = scalar_lea.vmem [#allocation7], %s682_s6 }
  0x2e   : > { %v366_v2 = vunpack.c.h.bf16 %v373_v0  ;;  %v365_v3 = vunpack.c.l.bf16 %v373_v0  ;;  %v362_v4 = vunpack.c.h.bf16 %v372_v1  ;;  %v371_v5 = vld [vmem:[%s686_s24 + $0x28] sm:$0xff]   ;;  %v361_v6 = vunpack.c.l.bf16 %v372_v1  ;;  %v370_v8 = vld [vmem:[%s686_s24 + $0x20] sm:$0xff]   ;;  %v369_v11 = vld [vmem:[%s686_s24 + $0x18] sm:$0xff]   ;;  %s246_s16 = sshll.u32 %s176_s8, 4  ;;  %s248_s17 = sshll.u32 %s244_s30, 4  ;;  %s247_s16 = int_to_ptr.vmem [resolvable:$true] %s246_s16  ;;  %s249_s17 = int_to_ptr.hbm [resolvable:$true] %s248_s17 }
  0x2f   : > { %v358_v7 = vunpack.c.h.bf16 %v371_v5  ;;  %v357_v9 = vunpack.c.l.bf16 %v371_v5  ;;  %v354_v10 = vunpack.c.h.bf16 %v370_v8  ;;  %v353_v12 = vunpack.c.l.bf16 %v370_v8  ;;  %v368_v14 = vld [vmem:[%s686_s24 + $0x10] sm:$0xff]   ;;  %v367_v17 = vld [vmem:[%s686_s24 + $0x8] sm:$0xff]   ;;  %v336_v20 = vld [vmem:[%s686_s24] sm:$0xff]   ;;  %s236_s19 = scalar_lea.sflag [#allocation4], %s682_s6  ;;  %s508_s25 = sshra.s32 %s249_s17, 4  ;;  %s509_s25 = int_to_ptr.hbm [resolvable:$true] %s508_s25 }
  0x30   : > { %210 = vmatpush.msra.mxu0 %v366_v2  ;;  %v350_v13 = vunpack.c.h.bf16 %v369_v11  ;;  %v349_v15 = vunpack.c.l.bf16 %v369_v11  ;;  %v346_v16 = vunpack.c.h.bf16 %v368_v14  ;;  %v345_v18 = vunpack.c.l.bf16 %v368_v14  ;;  %v209_v24 = vld [vmem:[#allocation5] sm:$0xff]  ;;  %s510_s26 = scalar_lea.hbm %s509_s25, 1  ;;  %s514_s13 = scalar_lea.hbm %s740_s2, 2 }
  0x31   : > { %v342_v19 = vunpack.c.h.bf16 %v367_v17  ;;  %v341_v21 = vunpack.c.l.bf16 %v367_v17  ;;  %v338_v22 = vunpack.c.h.bf16 %v336_v20  ;;  %v337_v23 = vunpack.c.l.bf16 %v336_v20  ;;  %p511_p4 = scmp.ne.s32.totalorder %s509_s25, %s510_s26  ;;  %p515_p0 = scmp.lt.s32.totalorder %s509_s25, %s740_s2 }
  0x32   : > { %211 = vmatpush.msra.mxu0 %v365_v3  ;;  %p516_p7 = scmp.lt.s32.totalorder %s514_s13, %s510_s26 }
  0x33   : > { %p512_p6 = pnand %p511_p4, %p637_p11 }
  0x34   : > { %212 = vmatpush.msra.mxu0 %v362_v4  ;;  %p517_p5 = por %p516_p7, %p515_p0 }
  0x35   : > { %p513_p13 = pneg %p512_p6 }
  0x36   : > { %213 = vmatpush.msra.mxu0 %v361_v6 }
  0x37   : > { %p518_p8 = pnand %p517_p5, %p513_p13 }
  0x38   : > { %214 = vmatpush.msra.mxu0 %v358_v7 }
  0x3a   : > { %215 = vmatpush.msra.mxu0 %v357_v9 }
  0x3c   : > { %216 = vmatpush.msra.mxu0 %v354_v10 }
  0x3e   : > { %217 = vmatpush.msra.mxu0 %v353_v12 }
  0x40   : > { %218 = vmatpush.msra.mxu0 %v350_v13 }
  0x42   : > { %219 = vmatpush.msra.mxu0 %v349_v15 }
  0x44   : > { %220 = vmatpush.msra.mxu0 %v346_v16 }
  0x46   : > { %221 = vmatpush.msra.mxu0 %v345_v18 }
  0x48   : > { %222 = vmatpush.msra.mxu0 %v342_v19 }
  0x4a   : > { %223 = vmatpush.msra.mxu0 %v341_v21 }
  0x4c   : > { %224 = vmatpush.msra.mxu0 %v338_v22 }
  0x4e   : > { %225 = vmatpush.msra.mxu0 %v337_v23 }
  0x4f   : > { %226 = vmatmul.f32.vlgmr.msra.gmra.mxu0 %v209_v24 }
  0xcc   : > { %v227_v25 = vpop.f32.mrf.mxu0 }
  0xcd   : > { %v231_v26 = vrot.slane %v227_v25, 1 }
  0xcf   : > { %v233_v27 = vadd.f32 %v231_v26, %v227_v25 }
  0xd1   : > { %234 = vst [vmem:[%s176_s8] sm:$0x1] %v233_v27 }
  0xd2   : > { %521 = shalt.err (!%p518_p8)
}
  0xd3   : > { %380 = dma.vmem_to_hbm [thread:$0]  (%p637_p11), %s247_s16, 16, %s249_s17, %s236_s19  }
  0xd4 PF: > { %s260_s3 = sand.u32 1, %s552_s9   ;;  %p747_p9 = scmp.ge.s32.totalorder %s564_s12, 2 }
  0xd5   : > { %s261_s5 = scalar_lea.sflag [#allocation4], %s260_s3 }
  0xd6   : > { %p391_p10 = pnand %p747_p9, %p641_p12 }
  0xd8   : > { %p392_p1 = pneg %p391_p10 }
  0xda   : > { %547 = dma.done.wait (%p392_p1), %s261_s5, 16  }
  0xdb   : > { %549 = vsyncadd (%p392_p1), %s261_s5, 4294967280  ;;  %p16_p2 = scmp.ge.s32.totalorder %s610_s15, 4   ;;  %s748_s9 = smov %s556_s10 }
  0xdc   : > { %s749_s10 = smov %s560_s11  ;;  %s750_s11 = smov %s622_s18 }
  0xdd   : > { %s751_s12 = smov %s610_s15  ;;  %18 = sbr.rel (!%p16_p2) target bundleno = 6 (0x6), region = 77 }
  0xe2   :  { %266 = vsyncpa [#allocation3], 1 }
  0xe3   :  { %268 = vsyncpa [#allocation3 + $0x1], 1 }
  0xe4   :  { %269 = vsyncpa [#allocation6], 1 }
  0xe5   :  { %270 = vsyncpa [#allocation4], 1 }
  0xe6   :  { %272 = vsyncpa [#allocation4 + $0x1], 1 }

</bundles_post_ra>
